<compile_context>
chip_gen: v7x
topology: tpu7x:2x2x1
jax: 0.10.0
libtpu: 0.0.40
codegen_flags: <defaults>
</compile_context>

<pallas_src>
import math
import functools

import jax
import jax.numpy as jnp
from jax.experimental import pallas as pl
from jax.experimental.pallas import tpu as pltpu


def _layer_norm(v, gamma, beta, eps):
    # One-pass LayerNorm: single pair of lane reductions (sum, sum-of-squares).
    inv_n = 1.0 / v.shape[-1]
    mu = jnp.sum(v, axis=-1, keepdims=True) * inv_n
    ms = jnp.sum(v * v, axis=-1, keepdims=True) * inv_n
    var = ms - mu * mu                      # biased variance (matches PyTorch LayerNorm)
    return (v - mu) * jax.lax.rsqrt(var + eps) * gamma + beta


def encoder_block_kernel(x_ref,
                         wqkv_ref, bqkv_ref, wo_ref, bo_ref,
                         g_ref, be_ref,
                         w1_ref, b1_ref, w2_ref, b2_ref,
                         o_ref, *, nheads, eps):
    bblk, S, D = x_ref.shape
    R = bblk * S
    dh = D // nheads
    scale = 1.0 / math.sqrt(dh)
    bf16 = jnp.bfloat16
    f32 = jnp.float32

    # Fold batch rows into the matmul M dimension.
    x = x_ref[...].astype(f32).reshape(R, D)              # (R, D) f32
    xb = x.astype(bf16)

    # ---- Fused QKV projection: one wide MXU matmul, bf16 in / f32 accumulate ----
    qkv = jnp.dot(xb, wqkv_ref[...], preferred_element_type=f32) + bqkv_ref[...]   # (R, 3D) f32
    qkv3 = qkv.astype(bf16).reshape(bblk, S, 3 * D)        # leading-dim split only

    gamma = g_ref[...]
    beta = be_ref[...]
    wo = wo_ref[...]                                       # (D, D) bf16

    # ---- Multi-head self-attention (mask=None), batched over the batch tile ----
    # Heads: static loop of batch-batched 3D einsums; head outputs are folded directly
    # into the output projection (no lane-axis concatenation).
    attn = jnp.zeros((R, D), f32)
    for h in range(nheads):
        off = h * dh
        qh = qkv3[:, :, off:off + dh]                      # (bblk, S, dh) bf16
        kh = qkv3[:, :, D + off:D + off + dh]
        vh = qkv3[:, :, 2 * D + off:2 * D + off + dh]

        s = jnp.einsum('bqd,bkd->bqk', qh, kh,
                       preferred_element_type=f32) * scale          # (bblk, S, S) f32
        s = s - jnp.max(s, axis=-1, keepdims=True)
        p = jnp.exp(s)
        l = jnp.sum(p, axis=-1, keepdims=True)
        p = p * pl.reciprocal(l, approx=True)              # attention-dropout: identity in eval
        ctx = jnp.einsum('bqk,bkd->bqd', p.astype(bf16), vh,
                         preferred_element_type=f32)                 # (bblk, S, dh) f32
        # per-head slice of Wo rows; summing over heads == concat(heads) @ Wo
        attn = attn + jnp.dot(ctx.reshape(R, dh).astype(bf16),
                              wo[off:off + dh, :],
                              preferred_element_type=f32)
    attn = attn + bo_ref[...]

    # dropout(train=False) is identity
    x1 = _layer_norm(attn + x, gamma, beta, eps)           # (R, D) f32

    # ---- Feed-forward network ----
    h1 = jnp.dot(x1.astype(bf16), w1_ref[...], preferred_element_type=f32) + b1_ref[...]
    # GELU (tanh approximation; PyTorch exact-erf GELU differs by <1e-3)
    # TODO(synk): switch to exact-erf GELU if/when lax.erf lowering is guaranteed in Mosaic.
    c = math.sqrt(2.0 / math.pi)
    h1 = 0.5 * h1 * (1.0 + jnp.tanh(c * (h1 + 0.044715 * h1 * h1 * h1)))
    h2 = jnp.dot(h1.astype(bf16), w2_ref[...], preferred_element_type=f32) + b2_ref[...]

    # dropout(train=False) is identity; shared LayerNorm params (as in reference module)
    x2 = _layer_norm(h2 + x1, gamma, beta, eps)

    # TODO(synk): for v5e with D < 128, a lane-padded output slab would avoid masked vst.msk stores.
    o_ref[...] = x2.reshape(bblk, S, D).astype(o_ref.dtype)


def transformer_encoder_block(x, params, *, nheads, eps=1e-5, max_block_rows=256):
    """x: (B, S, D) float32. params: dict of pre-transposed (in, out) weights/biases."""
    B, S, D = x.shape
    FF = params["w1"].shape[1]
    f32, bf16 = jnp.float32, jnp.bfloat16

    # Batch tile: largest divisor of B keeping bblk*S rows within a modest cap
    # (fills MXU sublanes when S is small; amortizes per-grid-step overhead).
    bblk = 1
    for cand in range(1, B + 1):
        if B % cand == 0 and cand * S <= max(max_block_rows, S):
            bblk = cand

    # Weight prep: fuse QKV, cast matmul weights to bf16, biases/LN params as 2-D f32.
    wqkv = jnp.concatenate([params["wq"], params["wk"], params["wv"]], axis=1).astype(bf16)
    bqkv = jnp.concatenate([params["bq"], params["bk"], params["bv"]], axis=0
                           ).astype(f32).reshape(1, 3 * D)
    wo = params["wo"].astype(bf16)
    bo = params["bo"].astype(f32).reshape(1, D)
    g = params["ln_g"].astype(f32).reshape(1, D)
    be = params["ln_b"].astype(f32).reshape(1, D)
    w1 = params["w1"].astype(bf16)
    b1 = params["b1"].astype(f32).reshape(1, FF)
    w2 = params["w2"].astype(bf16)
    b2 = params["b2"].astype(f32).reshape(1, D)

    plist = [wqkv, bqkv, wo, bo, g, be, w1, b1, w2, b2]

    def full_spec(p):
        return pl.BlockSpec(p.shape, lambda b: (0, 0))     # whole (2-D) param resident

    in_specs = [pl.BlockSpec((bblk, S, D), lambda b: (b, 0, 0))] + [full_spec(p) for p in plist]

    kernel = functools.partial(encoder_block_kernel, nheads=nheads, eps=eps)

    dh = D // nheads
    flops = (2 * B * S * (3 * D * D + D * D + 2 * D * FF)   # QKV + out-proj + FFN
             + 4 * B * nheads * S * S * dh)                 # scores + ctx
    transcendentals = B * nheads * S * S + B * S * FF       # exp + tanh(gelu)
    bytes_accessed = (2 * B * S * D * x.dtype.itemsize
                      + sum(int(p.size) * p.dtype.itemsize for p in plist))

    return pl.pallas_call(
        kernel,
        out_shape=jax.ShapeDtypeStruct((B, S, D), x.dtype),
        grid=(B // bblk,),
        in_specs=in_specs,
        out_specs=pl.BlockSpec((bblk, S, D), lambda b: (b, 0, 0)),
        compiler_params=pltpu.CompilerParams(
            dimension_semantics=("parallel",),
            vmem_limit_bytes=32 * 1024 * 1024),
        cost_estimate=pl.CostEstimate(
            flops=flops,
            transcendentals=transcendentals,
            bytes_accessed=bytes_accessed),
    )(x, *plist)


def init_params(key, dim, dim_ff):
    ks = jax.random.split(key, 12)
    f32 = jnp.float32

    def lin(kw, kb, n_in, n_out, scale=0.05):
        # stored already transposed to (in, out); equals PyTorch W(out,in).T
        w = (jax.random.normal(kw, (n_in, n_out)) * scale).astype(f32)
        b = (jax.random.normal(kb, (n_out,)) * 0.01).astype(f32)
        return w, b

    wq, bq = lin(ks[0], ks[1], dim, dim)
    wk, bk = lin(ks[2], ks[3], dim, dim)
    wv, bv = lin(ks[4], ks[5], dim, dim)
    wo, bo = lin(ks[6], ks[7], dim, dim)
    w1, b1 = lin(ks[8], ks[9], dim, dim_ff)
    w2, b2 = lin(ks[10], ks[11], dim_ff, dim)
    return dict(
        wq=wq, bq=bq, wk=wk, bk=bk, wv=wv, bv=bv, wo=wo, bo=bo,
        ln_g=jnp.ones((dim,), f32), ln_b=jnp.zeros((dim,), f32),
        w1=w1, b1=b1, w2=w2, b2=b2,
    )


if __name__ == "__main__":
    # Small shapes consistent with the module: batch=2, seq=8, dimension=32,
    # nheads=4, dim_feedforward=64.
    B, S, D, H, FF = 2, 8, 32, 4, 64

    key = jax.random.PRNGKey(0)
    kx, kp = jax.random.split(key)
    x = jax.random.normal(kx, (B, S, D), dtype=jnp.float32)
    params = init_params(kp, D, FF)

    out = transformer_encoder_block(x, params, nheads=H, eps=1e-5)
    out = jax.block_until_ready(out)
    assert out.shape == (B, S, D) and jnp.all(jnp.isfinite(out))
    print("KERNEL_OK")
</pallas_src>

<mosaic_0001>
module attributes {stable_mosaic.version = 11 : i64} {
  func.func @encoder_block_kernel(%arg0: i32, %arg1: memref<2x8x32xf32, #tpu.memory_space<vmem>>, %arg2: memref<32x96xbf16, #tpu.memory_space<vmem>>, %arg3: memref<1x96xf32, #tpu.memory_space<vmem>>, %arg4: memref<32x32xbf16, #tpu.memory_space<vmem>>, %arg5: memref<1x32xf32, #tpu.memory_space<vmem>>, %arg6: memref<1x32xf32, #tpu.memory_space<vmem>>, %arg7: memref<1x32xf32, #tpu.memory_space<vmem>>, %arg8: memref<32x64xbf16, #tpu.memory_space<vmem>>, %arg9: memref<1x64xf32, #tpu.memory_space<vmem>>, %arg10: memref<64x32xbf16, #tpu.memory_space<vmem>>, %arg11: memref<1x32xf32, #tpu.memory_space<vmem>>, %arg12: memref<2x8x32xf32, #tpu.memory_space<vmem>>) attributes {dimension_semantics = [#tpu.dimension_semantics<parallel>], iteration_bounds = array<i64: 1>, scalar_prefetch = 0 : i64, scratch_operands = 0 : i64, tpu.core_type = #tpu.core_type<tc>, window_params = [{transform_indices = @transform_0, window_bounds = array<i64: 2, 8, 32>}, {pipeline_mode = #tpu.pipeline_mode<synchronous>, transform_indices = @transform_1, window_bounds = array<i64: 32, 96>}, {pipeline_mode = #tpu.pipeline_mode<synchronous>, transform_indices = @transform_2, window_bounds = array<i64: 1, 96>}, {pipeline_mode = #tpu.pipeline_mode<synchronous>, transform_indices = @transform_3, window_bounds = array<i64: 32, 32>}, {pipeline_mode = #tpu.pipeline_mode<synchronous>, transform_indices = @transform_4, window_bounds = array<i64: 1, 32>}, {pipeline_mode = #tpu.pipeline_mode<synchronous>, transform_indices = @transform_5, window_bounds = array<i64: 1, 32>}, {pipeline_mode = #tpu.pipeline_mode<synchronous>, transform_indices = @transform_6, window_bounds = array<i64: 1, 32>}, {pipeline_mode = #tpu.pipeline_mode<synchronous>, transform_indices = @transform_7, window_bounds = array<i64: 32, 64>}, {pipeline_mode = #tpu.pipeline_mode<synchronous>, transform_indices = @transform_8, window_bounds = array<i64: 1, 64>}, {pipeline_mode = #tpu.pipeline_mode<synchronous>, transform_indices = @transform_9, window_bounds = array<i64: 64, 32>}, {pipeline_mode = #tpu.pipeline_mode<synchronous>, transform_indices = @transform_10, window_bounds = array<i64: 1, 32>}, {transform_indices = @transform_11, window_bounds = array<i64: 2, 8, 32>}]} {
    %c0 = arith.constant 0 : index
    %c0_0 = arith.constant 0 : index
    %c0_1 = arith.constant 0 : index
    %0 = vector.load %arg1[%c0, %c0_0, %c0_1] : memref<2x8x32xf32, #tpu.memory_space<vmem>>, vector<2x8x32xf32>
    %1 = vector.shape_cast %0 : vector<2x8x32xf32> to vector<16x32xf32>
    %2 = arith.truncf %1 : vector<16x32xf32> to vector<16x32xbf16>
    %c0_2 = arith.constant 0 : index
    %c0_3 = arith.constant 0 : index
    %3 = vector.load %arg2[%c0_2, %c0_3] : memref<32x96xbf16, #tpu.memory_space<vmem>>, vector<32x96xbf16>
    %cst = arith.constant dense<0.000000e+00> : vector<16x96xf32>
    %4 = tpu.matmul %2, %3, %cst {dimension_numbers = #tpu.dot_dimension_numbers<[1], [0], [0], [1], [0, 0, 1, 1], [], []>} : vector<16x32xbf16>, vector<32x96xbf16>, vector<16x96xf32> -> vector<16x96xf32>
    %c0_4 = arith.constant 0 : index
    %c0_5 = arith.constant 0 : index
    %5 = vector.load %arg3[%c0_4, %c0_5] : memref<1x96xf32, #tpu.memory_space<vmem>>, vector<1x96xf32>
    %6 = vector.broadcast %5 : vector<1x96xf32> to vector<16x96xf32>
    %7 = arith.addf %4, %6 : vector<16x96xf32>
    %8 = arith.truncf %7 : vector<16x96xf32> to vector<16x96xbf16>
    %9 = vector.shape_cast %8 : vector<16x96xbf16> to vector<2x8x96xbf16>
    %c0_6 = arith.constant 0 : index
    %c0_7 = arith.constant 0 : index
    %10 = vector.load %arg6[%c0_6, %c0_7] : memref<1x32xf32, #tpu.memory_space<vmem>>, vector<1x32xf32>
    %c0_8 = arith.constant 0 : index
    %c0_9 = arith.constant 0 : index
    %11 = vector.load %arg7[%c0_8, %c0_9] : memref<1x32xf32, #tpu.memory_space<vmem>>, vector<1x32xf32>
    %c0_10 = arith.constant 0 : index
    %c0_11 = arith.constant 0 : index
    %12 = vector.load %arg4[%c0_10, %c0_11] : memref<32x32xbf16, #tpu.memory_space<vmem>>, vector<32x32xbf16>
    %cst_12 = arith.constant 0.000000e+00 : f32
    %13 = vector.broadcast %cst_12 : f32 to vector<16x32xf32>
    %14 = vector.extract_strided_slice %9 {offsets = [0, 0, 0], sizes = [2, 8, 8], strides = [1, 1, 1]} : vector<2x8x96xbf16> to vector<2x8x8xbf16>
    %15 = vector.extract_strided_slice %9 {offsets = [0, 0, 32], sizes = [2, 8, 8], strides = [1, 1, 1]} : vector<2x8x96xbf16> to vector<2x8x8xbf16>
    %16 = vector.extract_strided_slice %9 {offsets = [0, 0, 64], sizes = [2, 8, 8], strides = [1, 1, 1]} : vector<2x8x96xbf16> to vector<2x8x8xbf16>
    "tpu.trace_start"() <{level = 10 : i32, message = "bqd,bkd->bqk"}> : () -> ()
    %cst_13 = arith.constant dense<0.000000e+00> : vector<2x8x8xf32>
    %17 = tpu.matmul %14, %15, %cst_13 {dimension_numbers = #tpu.dot_dimension_numbers<[2], [2], [1], [1], [0, 0, 0, 1, 1, 1], [0], [0]>} : vector<2x8x8xbf16>, vector<2x8x8xbf16>, vector<2x8x8xf32> -> vector<2x8x8xf32>
    "tpu.trace_stop"() : () -> ()
    %cst_14 = arith.constant 0.353553385 : f32
    %18 = vector.broadcast %cst_14 : f32 to vector<2x8x8xf32>
    %19 = arith.mulf %17, %18 : vector<2x8x8xf32>
    %cst_15 = arith.constant dense<0xFF800000> : vector<2x8xf32>
    %20 = vector.multi_reduction <maximumf>, %19, %cst_15 [2] : vector<2x8x8xf32> to vector<2x8xf32>
    %21 = vector.shape_cast %20 : vector<2x8xf32> to vector<2x8x1xf32>
    %22 = vector.broadcast %21 : vector<2x8x1xf32> to vector<2x8x8xf32>
    %23 = arith.subf %19, %22 : vector<2x8x8xf32>
    %24 = math.exp %23 : vector<2x8x8xf32>
    %cst_16 = arith.constant dense<0.000000e+00> : vector<2x8xf32>
    %25 = vector.multi_reduction <add>, %24, %cst_16 [2] : vector<2x8x8xf32> to vector<2x8xf32>
    %26 = vector.shape_cast %25 : vector<2x8xf32> to vector<2x8x1xf32>
    %27 = tpu.reciprocal %26 {approx = true} : vector<2x8x1xf32> -> vector<2x8x1xf32>
    %28 = vector.broadcast %27 : vector<2x8x1xf32> to vector<2x8x8xf32>
    %29 = arith.mulf %24, %28 : vector<2x8x8xf32>
    %30 = arith.truncf %29 : vector<2x8x8xf32> to vector<2x8x8xbf16>
    "tpu.trace_start"() <{level = 10 : i32, message = "bqk,bkd->bqd"}> : () -> ()
    %cst_17 = arith.constant dense<0.000000e+00> : vector<2x8x8xf32>
    %31 = tpu.matmul %30, %16, %cst_17 {dimension_numbers = #tpu.dot_dimension_numbers<[2], [1], [1], [2], [0, 0, 0, 1, 1, 2], [0], [0]>} : vector<2x8x8xbf16>, vector<2x8x8xbf16>, vector<2x8x8xf32> -> vector<2x8x8xf32>
    "tpu.trace_stop"() : () -> ()
    %32 = vector.shape_cast %31 : vector<2x8x8xf32> to vector<16x8xf32>
    %33 = arith.truncf %32 : vector<16x8xf32> to vector<16x8xbf16>
    %34 = vector.extract_strided_slice %12 {offsets = [0, 0], sizes = [8, 32], strides = [1, 1]} : vector<32x32xbf16> to vector<8x32xbf16>
    %cst_18 = arith.constant dense<0.000000e+00> : vector<16x32xf32>
    %35 = tpu.matmul %33, %34, %cst_18 {dimension_numbers = #tpu.dot_dimension_numbers<[1], [0], [0], [1], [0, 0, 1, 1], [], []>} : vector<16x8xbf16>, vector<8x32xbf16>, vector<16x32xf32> -> vector<16x32xf32>
    %36 = arith.addf %13, %35 : vector<16x32xf32>
    %37 = vector.extract_strided_slice %9 {offsets = [0, 0, 8], sizes = [2, 8, 8], strides = [1, 1, 1]} : vector<2x8x96xbf16> to vector<2x8x8xbf16>
    %38 = vector.extract_strided_slice %9 {offsets = [0, 0, 40], sizes = [2, 8, 8], strides = [1, 1, 1]} : vector<2x8x96xbf16> to vector<2x8x8xbf16>
    %39 = vector.extract_strided_slice %9 {offsets = [0, 0, 72], sizes = [2, 8, 8], strides = [1, 1, 1]} : vector<2x8x96xbf16> to vector<2x8x8xbf16>
    "tpu.trace_start"() <{level = 10 : i32, message = "bqd,bkd->bqk"}> : () -> ()
    %cst_19 = arith.constant dense<0.000000e+00> : vector<2x8x8xf32>
    %40 = tpu.matmul %37, %38, %cst_19 {dimension_numbers = #tpu.dot_dimension_numbers<[2], [2], [1], [1], [0, 0, 0, 1, 1, 1], [0], [0]>} : vector<2x8x8xbf16>, vector<2x8x8xbf16>, vector<2x8x8xf32> -> vector<2x8x8xf32>
    "tpu.trace_stop"() : () -> ()
    %cst_20 = arith.constant 0.353553385 : f32
    %41 = vector.broadcast %cst_20 : f32 to vector<2x8x8xf32>
    %42 = arith.mulf %40, %41 : vector<2x8x8xf32>
    %cst_21 = arith.constant dense<0xFF800000> : vector<2x8xf32>
    %43 = vector.multi_reduction <maximumf>, %42, %cst_21 [2] : vector<2x8x8xf32> to vector<2x8xf32>
    %44 = vector.shape_cast %43 : vector<2x8xf32> to vector<2x8x1xf32>
    %45 = vector.broadcast %44 : vector<2x8x1xf32> to vector<2x8x8xf32>
    %46 = arith.subf %42, %45 : vector<2x8x8xf32>
    %47 = math.exp %46 : vector<2x8x8xf32>
    %cst_22 = arith.constant dense<0.000000e+00> : vector<2x8xf32>
    %48 = vector.multi_reduction <add>, %47, %cst_22 [2] : vector<2x8x8xf32> to vector<2x8xf32>
    %49 = vector.shape_cast %48 : vector<2x8xf32> to vector<2x8x1xf32>
    %50 = tpu.reciprocal %49 {approx = true} : vector<2x8x1xf32> -> vector<2x8x1xf32>
    %51 = vector.broadcast %50 : vector<2x8x1xf32> to vector<2x8x8xf32>
    %52 = arith.mulf %47, %51 : vector<2x8x8xf32>
    %53 = arith.truncf %52 : vector<2x8x8xf32> to vector<2x8x8xbf16>
    "tpu.trace_start"() <{level = 10 : i32, message = "bqk,bkd->bqd"}> : () -> ()
    %cst_23 = arith.constant dense<0.000000e+00> : vector<2x8x8xf32>
    %54 = tpu.matmul %53, %39, %cst_23 {dimension_numbers = #tpu.dot_dimension_numbers<[2], [1], [1], [2], [0, 0, 0, 1, 1, 2], [0], [0]>} : vector<2x8x8xbf16>, vector<2x8x8xbf16>, vector<2x8x8xf32> -> vector<2x8x8xf32>
    "tpu.trace_stop"() : () -> ()
    %55 = vector.shape_cast %54 : vector<2x8x8xf32> to vector<16x8xf32>
    %56 = arith.truncf %55 : vector<16x8xf32> to vector<16x8xbf16>
    %57 = vector.extract_strided_slice %12 {offsets = [8, 0], sizes = [8, 32], strides = [1, 1]} : vector<32x32xbf16> to vector<8x32xbf16>
    %cst_24 = arith.constant dense<0.000000e+00> : vector<16x32xf32>
    %58 = tpu.matmul %56, %57, %cst_24 {dimension_numbers = #tpu.dot_dimension_numbers<[1], [0], [0], [1], [0, 0, 1, 1], [], []>} : vector<16x8xbf16>, vector<8x32xbf16>, vector<16x32xf32> -> vector<16x32xf32>
    %59 = arith.addf %36, %58 : vector<16x32xf32>
    %60 = vector.extract_strided_slice %9 {offsets = [0, 0, 16], sizes = [2, 8, 8], strides = [1, 1, 1]} : vector<2x8x96xbf16> to vector<2x8x8xbf16>
    %61 = vector.extract_strided_slice %9 {offsets = [0, 0, 48], sizes = [2, 8, 8], strides = [1, 1, 1]} : vector<2x8x96xbf16> to vector<2x8x8xbf16>
    %62 = vector.extract_strided_slice %9 {offsets = [0, 0, 80], sizes = [2, 8, 8], strides = [1, 1, 1]} : vector<2x8x96xbf16> to vector<2x8x8xbf16>
    "tpu.trace_start"() <{level = 10 : i32, message = "bqd,bkd->bqk"}> : () -> ()
    %cst_25 = arith.constant dense<0.000000e+00> : vector<2x8x8xf32>
    %63 = tpu.matmul %60, %61, %cst_25 {dimension_numbers = #tpu.dot_dimension_numbers<[2], [2], [1], [1], [0, 0, 0, 1, 1, 1], [0], [0]>} : vector<2x8x8xbf16>, vector<2x8x8xbf16>, vector<2x8x8xf32> -> vector<2x8x8xf32>
    "tpu.trace_stop"() : () -> ()
    %cst_26 = arith.constant 0.353553385 : f32
    %64 = vector.broadcast %cst_26 : f32 to vector<2x8x8xf32>
    %65 = arith.mulf %63, %64 : vector<2x8x8xf32>
    %cst_27 = arith.constant dense<0xFF800000> : vector<2x8xf32>
    %66 = vector.multi_reduction <maximumf>, %65, %cst_27 [2] : vector<2x8x8xf32> to vector<2x8xf32>
    %67 = vector.shape_cast %66 : vector<2x8xf32> to vector<2x8x1xf32>
    %68 = vector.broadcast %67 : vector<2x8x1xf32> to vector<2x8x8xf32>
    %69 = arith.subf %65, %68 : vector<2x8x8xf32>
    %70 = math.exp %69 : vector<2x8x8xf32>
    %cst_28 = arith.constant dense<0.000000e+00> : vector<2x8xf32>
    %71 = vector.multi_reduction <add>, %70, %cst_28 [2] : vector<2x8x8xf32> to vector<2x8xf32>
    %72 = vector.shape_cast %71 : vector<2x8xf32> to vector<2x8x1xf32>
    %73 = tpu.reciprocal %72 {approx = true} : vector<2x8x1xf32> -> vector<2x8x1xf32>
    %74 = vector.broadcast %73 : vector<2x8x1xf32> to vector<2x8x8xf32>
    %75 = arith.mulf %70, %74 : vector<2x8x8xf32>
    %76 = arith.truncf %75 : vector<2x8x8xf32> to vector<2x8x8xbf16>
    "tpu.trace_start"() <{level = 10 : i32, message = "bqk,bkd->bqd"}> : () -> ()
    %cst_29 = arith.constant dense<0.000000e+00> : vector<2x8x8xf32>
    %77 = tpu.matmul %76, %62, %cst_29 {dimension_numbers = #tpu.dot_dimension_numbers<[2], [1], [1], [2], [0, 0, 0, 1, 1, 2], [0], [0]>} : vector<2x8x8xbf16>, vector<2x8x8xbf16>, vector<2x8x8xf32> -> vector<2x8x8xf32>
    "tpu.trace_stop"() : () -> ()
    %78 = vector.shape_cast %77 : vector<2x8x8xf32> to vector<16x8xf32>
    %79 = arith.truncf %78 : vector<16x8xf32> to vector<16x8xbf16>
    %80 = vector.extract_strided_slice %12 {offsets = [16, 0], sizes = [8, 32], strides = [1, 1]} : vector<32x32xbf16> to vector<8x32xbf16>
    %cst_30 = arith.constant dense<0.000000e+00> : vector<16x32xf32>
    %81 = tpu.matmul %79, %80, %cst_30 {dimension_numbers = #tpu.dot_dimension_numbers<[1], [0], [0], [1], [0, 0, 1, 1], [], []>} : vector<16x8xbf16>, vector<8x32xbf16>, vector<16x32xf32> -> vector<16x32xf32>
    %82 = arith.addf %59, %81 : vector<16x32xf32>
    %83 = vector.extract_strided_slice %9 {offsets = [0, 0, 24], sizes = [2, 8, 8], strides = [1, 1, 1]} : vector<2x8x96xbf16> to vector<2x8x8xbf16>
    %84 = vector.extract_strided_slice %9 {offsets = [0, 0, 56], sizes = [2, 8, 8], strides = [1, 1, 1]} : vector<2x8x96xbf16> to vector<2x8x8xbf16>
    %85 = vector.extract_strided_slice %9 {offsets = [0, 0, 88], sizes = [2, 8, 8], strides = [1, 1, 1]} : vector<2x8x96xbf16> to vector<2x8x8xbf16>
    "tpu.trace_start"() <{level = 10 : i32, message = "bqd,bkd->bqk"}> : () -> ()
    %cst_31 = arith.constant dense<0.000000e+00> : vector<2x8x8xf32>
    %86 = tpu.matmul %83, %84, %cst_31 {dimension_numbers = #tpu.dot_dimension_numbers<[2], [2], [1], [1], [0, 0, 0, 1, 1, 1], [0], [0]>} : vector<2x8x8xbf16>, vector<2x8x8xbf16>, vector<2x8x8xf32> -> vector<2x8x8xf32>
    "tpu.trace_stop"() : () -> ()
    %cst_32 = arith.constant 0.353553385 : f32
    %87 = vector.broadcast %cst_32 : f32 to vector<2x8x8xf32>
    %88 = arith.mulf %86, %87 : vector<2x8x8xf32>
    %cst_33 = arith.constant dense<0xFF800000> : vector<2x8xf32>
    %89 = vector.multi_reduction <maximumf>, %88, %cst_33 [2] : vector<2x8x8xf32> to vector<2x8xf32>
    %90 = vector.shape_cast %89 : vector<2x8xf32> to vector<2x8x1xf32>
    %91 = vector.broadcast %90 : vector<2x8x1xf32> to vector<2x8x8xf32>
    %92 = arith.subf %88, %91 : vector<2x8x8xf32>
    %93 = math.exp %92 : vector<2x8x8xf32>
    %cst_34 = arith.constant dense<0.000000e+00> : vector<2x8xf32>
    %94 = vector.multi_reduction <add>, %93, %cst_34 [2] : vector<2x8x8xf32> to vector<2x8xf32>
    %95 = vector.shape_cast %94 : vector<2x8xf32> to vector<2x8x1xf32>
    %96 = tpu.reciprocal %95 {approx = true} : vector<2x8x1xf32> -> vector<2x8x1xf32>
    %97 = vector.broadcast %96 : vector<2x8x1xf32> to vector<2x8x8xf32>
    %98 = arith.mulf %93, %97 : vector<2x8x8xf32>
    %99 = arith.truncf %98 : vector<2x8x8xf32> to vector<2x8x8xbf16>
    "tpu.trace_start"() <{level = 10 : i32, message = "bqk,bkd->bqd"}> : () -> ()
    %cst_35 = arith.constant dense<0.000000e+00> : vector<2x8x8xf32>
    %100 = tpu.matmul %99, %85, %cst_35 {dimension_numbers = #tpu.dot_dimension_numbers<[2], [1], [1], [2], [0, 0, 0, 1, 1, 2], [0], [0]>} : vector<2x8x8xbf16>, vector<2x8x8xbf16>, vector<2x8x8xf32> -> vector<2x8x8xf32>
    "tpu.trace_stop"() : () -> ()
    %101 = vector.shape_cast %100 : vector<2x8x8xf32> to vector<16x8xf32>
    %102 = arith.truncf %101 : vector<16x8xf32> to vector<16x8xbf16>
    %103 = vector.extract_strided_slice %12 {offsets = [24, 0], sizes = [8, 32], strides = [1, 1]} : vector<32x32xbf16> to vector<8x32xbf16>
    %cst_36 = arith.constant dense<0.000000e+00> : vector<16x32xf32>
    %104 = tpu.matmul %102, %103, %cst_36 {dimension_numbers = #tpu.dot_dimension_numbers<[1], [0], [0], [1], [0, 0, 1, 1], [], []>} : vector<16x8xbf16>, vector<8x32xbf16>, vector<16x32xf32> -> vector<16x32xf32>
    %105 = arith.addf %82, %104 : vector<16x32xf32>
    %c0_37 = arith.constant 0 : index
    %c0_38 = arith.constant 0 : index
    %106 = vector.load %arg5[%c0_37, %c0_38] : memref<1x32xf32, #tpu.memory_space<vmem>>, vector<1x32xf32>
    %107 = vector.broadcast %106 : vector<1x32xf32> to vector<16x32xf32>
    %108 = arith.addf %105, %107 : vector<16x32xf32>
    %109 = arith.addf %108, %1 : vector<16x32xf32>
    %cst_39 = arith.constant dense<0.000000e+00> : vector<16xf32>
    %110 = vector.multi_reduction <add>, %109, %cst_39 [1] : vector<16x32xf32> to vector<16xf32>
    %111 = vector.shape_cast %110 : vector<16xf32> to vector<16x1xf32>
    %cst_40 = arith.constant 3.125000e-02 : f32
    %112 = vector.broadcast %cst_40 : f32 to vector<16x1xf32>
    %113 = arith.mulf %111, %112 : vector<16x1xf32>
    %114 = arith.mulf %109, %109 : vector<16x32xf32>
    %cst_41 = arith.constant dense<0.000000e+00> : vector<16xf32>
    %115 = vector.multi_reduction <add>, %114, %cst_41 [1] : vector<16x32xf32> to vector<16xf32>
    %116 = vector.shape_cast %115 : vector<16xf32> to vector<16x1xf32>
    %cst_42 = arith.constant 3.125000e-02 : f32
    %117 = vector.broadcast %cst_42 : f32 to vector<16x1xf32>
    %118 = arith.mulf %116, %117 : vector<16x1xf32>
    %119 = arith.mulf %113, %113 : vector<16x1xf32>
    %120 = arith.subf %118, %119 : vector<16x1xf32>
    %121 = vector.broadcast %113 : vector<16x1xf32> to vector<16x32xf32>
    %122 = arith.subf %109, %121 : vector<16x32xf32>
    %cst_43 = arith.constant 9.99999974E-6 : f32
    %123 = vector.broadcast %cst_43 : f32 to vector<16x1xf32>
    %124 = arith.addf %120, %123 : vector<16x1xf32>
    %125 = math.rsqrt %124 : vector<16x1xf32>
    %126 = vector.broadcast %125 : vector<16x1xf32> to vector<16x32xf32>
    %127 = arith.mulf %122, %126 : vector<16x32xf32>
    %128 = vector.broadcast %10 : vector<1x32xf32> to vector<16x32xf32>
    %129 = arith.mulf %127, %128 : vector<16x32xf32>
    %130 = vector.broadcast %11 : vector<1x32xf32> to vector<16x32xf32>
    %131 = arith.addf %129, %130 : vector<16x32xf32>
    %132 = arith.truncf %131 : vector<16x32xf32> to vector<16x32xbf16>
    %c0_44 = arith.constant 0 : index
    %c0_45 = arith.constant 0 : index
    %133 = vector.load %arg8[%c0_44, %c0_45] : memref<32x64xbf16, #tpu.memory_space<vmem>>, vector<32x64xbf16>
    %cst_46 = arith.constant dense<0.000000e+00> : vector<16x64xf32>
    %134 = tpu.matmul %132, %133, %cst_46 {dimension_numbers = #tpu.dot_dimension_numbers<[1], [0], [0], [1], [0, 0, 1, 1], [], []>} : vector<16x32xbf16>, vector<32x64xbf16>, vector<16x64xf32> -> vector<16x64xf32>
    %c0_47 = arith.constant 0 : index
    %c0_48 = arith.constant 0 : index
    %135 = vector.load %arg9[%c0_47, %c0_48] : memref<1x64xf32, #tpu.memory_space<vmem>>, vector<1x64xf32>
    %136 = vector.broadcast %135 : vector<1x64xf32> to vector<16x64xf32>
    %137 = arith.addf %134, %136 : vector<16x64xf32>
    %cst_49 = arith.constant 5.000000e-01 : f32
    %138 = vector.broadcast %cst_49 : f32 to vector<16x64xf32>
    %139 = arith.mulf %138, %137 : vector<16x64xf32>
    %cst_50 = arith.constant 4.471500e-02 : f32
    %140 = vector.broadcast %cst_50 : f32 to vector<16x64xf32>
    %141 = arith.mulf %140, %137 : vector<16x64xf32>
    %142 = arith.mulf %141, %137 : vector<16x64xf32>
    %143 = arith.mulf %142, %137 : vector<16x64xf32>
    %144 = arith.addf %137, %143 : vector<16x64xf32>
    %cst_51 = arith.constant 0.797884583 : f32
    %145 = vector.broadcast %cst_51 : f32 to vector<16x64xf32>
    %146 = arith.mulf %145, %144 : vector<16x64xf32>
    %147 = math.tanh %146 : vector<16x64xf32>
    %cst_52 = arith.constant 1.000000e+00 : f32
    %148 = vector.broadcast %cst_52 : f32 to vector<16x64xf32>
    %149 = arith.addf %148, %147 : vector<16x64xf32>
    %150 = arith.mulf %139, %149 : vector<16x64xf32>
    %151 = arith.truncf %150 : vector<16x64xf32> to vector<16x64xbf16>
    %c0_53 = arith.constant 0 : index
    %c0_54 = arith.constant 0 : index
    %152 = vector.load %arg10[%c0_53, %c0_54] : memref<64x32xbf16, #tpu.memory_space<vmem>>, vector<64x32xbf16>
    %cst_55 = arith.constant dense<0.000000e+00> : vector<16x32xf32>
    %153 = tpu.matmul %151, %152, %cst_55 {dimension_numbers = #tpu.dot_dimension_numbers<[1], [0], [0], [1], [0, 0, 1, 1], [], []>} : vector<16x64xbf16>, vector<64x32xbf16>, vector<16x32xf32> -> vector<16x32xf32>
    %c0_56 = arith.constant 0 : index
    %c0_57 = arith.constant 0 : index
    %154 = vector.load %arg11[%c0_56, %c0_57] : memref<1x32xf32, #tpu.memory_space<vmem>>, vector<1x32xf32>
    %155 = vector.broadcast %154 : vector<1x32xf32> to vector<16x32xf32>
    %156 = arith.addf %153, %155 : vector<16x32xf32>
    %157 = arith.addf %156, %131 : vector<16x32xf32>
    %cst_58 = arith.constant dense<0.000000e+00> : vector<16xf32>
    %158 = vector.multi_reduction <add>, %157, %cst_58 [1] : vector<16x32xf32> to vector<16xf32>
    %159 = vector.shape_cast %158 : vector<16xf32> to vector<16x1xf32>
    %cst_59 = arith.constant 3.125000e-02 : f32
    %160 = vector.broadcast %cst_59 : f32 to vector<16x1xf32>
    %161 = arith.mulf %159, %160 : vector<16x1xf32>
    %162 = arith.mulf %157, %157 : vector<16x32xf32>
    %cst_60 = arith.constant dense<0.000000e+00> : vector<16xf32>
    %163 = vector.multi_reduction <add>, %162, %cst_60 [1] : vector<16x32xf32> to vector<16xf32>
    %164 = vector.shape_cast %163 : vector<16xf32> to vector<16x1xf32>
    %cst_61 = arith.constant 3.125000e-02 : f32
    %165 = vector.broadcast %cst_61 : f32 to vector<16x1xf32>
    %166 = arith.mulf %164, %165 : vector<16x1xf32>
    %167 = arith.mulf %161, %161 : vector<16x1xf32>
    %168 = arith.subf %166, %167 : vector<16x1xf32>
    %169 = vector.broadcast %161 : vector<16x1xf32> to vector<16x32xf32>
    %170 = arith.subf %157, %169 : vector<16x32xf32>
    %cst_62 = arith.constant 9.99999974E-6 : f32
    %171 = vector.broadcast %cst_62 : f32 to vector<16x1xf32>
    %172 = arith.addf %168, %171 : vector<16x1xf32>
    %173 = math.rsqrt %172 : vector<16x1xf32>
    %174 = vector.broadcast %173 : vector<16x1xf32> to vector<16x32xf32>
    %175 = arith.mulf %170, %174 : vector<16x32xf32>
    %176 = vector.broadcast %10 : vector<1x32xf32> to vector<16x32xf32>
    %177 = arith.mulf %175, %176 : vector<16x32xf32>
    %178 = vector.broadcast %11 : vector<1x32xf32> to vector<16x32xf32>
    %179 = arith.addf %177, %178 : vector<16x32xf32>
    %180 = vector.shape_cast %179 : vector<16x32xf32> to vector<2x8x32xf32>
    %c0_63 = arith.constant 0 : index
    %c0_64 = arith.constant 0 : index
    %c0_65 = arith.constant 0 : index
    %181 = vector.load %arg12[%c0_63, %c0_64, %c0_65] : memref<2x8x32xf32, #tpu.memory_space<vmem>>, vector<2x8x32xf32>
    tpu.vector_store %arg12[%c0_63, %c0_64, %c0_65], %180 {strides = array<i32>} : memref<2x8x32xf32, #tpu.memory_space<vmem>>, vector<2x8x32xf32>,
    return
  }
  func.func @transform_0(%arg0: i32) -> (i32, i32, i32) {
    %c0_i32 = arith.constant 0 : i32
    %c0_i32_0 = arith.constant 0 : i32
    %c0_i32_1 = arith.constant 0 : i32
    return %arg0, %c0_i32, %c0_i32_0 : i32, i32, i32
  }
  func.func @transform_1(%arg0: i32) -> (i32, i32) {
    %c0_i32 = arith.constant 0 : i32
    %c0_i32_0 = arith.constant 0 : i32
    %c0_i32_1 = arith.constant 0 : i32
    return %c0_i32, %c0_i32_0 : i32, i32
  }
  func.func @transform_2(%arg0: i32) -> (i32, i32) {
    %c0_i32 = arith.constant 0 : i32
    %c0_i32_0 = arith.constant 0 : i32
    %c0_i32_1 = arith.constant 0 : i32
    return %c0_i32, %c0_i32_0 : i32, i32
  }
  func.func @transform_3(%arg0: i32) -> (i32, i32) {
    %c0_i32 = arith.constant 0 : i32
    %c0_i32_0 = arith.constant 0 : i32
    %c0_i32_1 = arith.constant 0 : i32
    return %c0_i32, %c0_i32_0 : i32, i32
  }
  func.func @transform_4(%arg0: i32) -> (i32, i32) {
    %c0_i32 = arith.constant 0 : i32
    %c0_i32_0 = arith.constant 0 : i32
    %c0_i32_1 = arith.constant 0 : i32
    return %c0_i32, %c0_i32_0 : i32, i32
  }
  func.func @transform_5(%arg0: i32) -> (i32, i32) {
    %c0_i32 = arith.constant 0 : i32
    %c0_i32_0 = arith.constant 0 : i32
    %c0_i32_1 = arith.constant 0 : i32
    return %c0_i32, %c0_i32_0 : i32, i32
  }
  func.func @transform_6(%arg0: i32) -> (i32, i32) {
    %c0_i32 = arith.constant 0 : i32
    %c0_i32_0 = arith.constant 0 : i32
    %c0_i32_1 = arith.constant 0 : i32
    return %c0_i32, %c0_i32_0 : i32, i32
  }
  func.func @transform_7(%arg0: i32) -> (i32, i32) {
    %c0_i32 = arith.constant 0 : i32
    %c0_i32_0 = arith.constant 0 : i32
    %c0_i32_1 = arith.constant 0 : i32
    return %c0_i32, %c0_i32_0 : i32, i32
  }
  func.func @transform_8(%arg0: i32) -> (i32, i32) {
    %c0_i32 = arith.constant 0 : i32
    %c0_i32_0 = arith.constant 0 : i32
    %c0_i32_1 = arith.constant 0 : i32
    return %c0_i32, %c0_i32_0 : i32, i32
  }
  func.func @transform_9(%arg0: i32) -> (i32, i32) {
    %c0_i32 = arith.constant 0 : i32
    %c0_i32_0 = arith.constant 0 : i32
    %c0_i32_1 = arith.constant 0 : i32
    return %c0_i32, %c0_i32_0 : i32, i32
  }
  func.func @transform_10(%arg0: i32) -> (i32, i32) {
    %c0_i32 = arith.constant 0 : i32
    %c0_i32_0 = arith.constant 0 : i32
    %c0_i32_1 = arith.constant 0 : i32
    return %c0_i32, %c0_i32_0 : i32, i32
  }
  func.func @transform_11(%arg0: i32) -> (i32, i32, i32) {
    %c0_i32 = arith.constant 0 : i32
    %c0_i32_0 = arith.constant 0 : i32
    %c0_i32_1 = arith.constant 0 : i32
    return %arg0, %c0_i32, %c0_i32_0 : i32, i32, i32
  }
}

</mosaic_0001>

<bundles_post_ra>
// kernel: tpu_custom_call.1
= control target key start
LH: loop header
LB: loop body
LE: loop exit
PB: predicated region body
PF: predicated region fallthrough
CT: control target
= control target key end

     0   :  { %16 = vsyncpa [#allocation3], 0  ;;  %s2229_s0 = inlined_call_operand.vmem [shape: f32[2,8,32], index: 0, kind: input, shape index: {}]   ;;  %s2230_s1 = inlined_call_operand.vmem [shape: bf16[32,96], index: 1, kind: input, shape index: {}]   ;;  %s2231_s2 = inlined_call_operand.vmem [shape: f32[1,96], index: 2, kind: input, shape index: {}]   ;;  %s2232_s3 = inlined_call_operand.vmem [shape: bf16[32,32], index: 3, kind: input, shape index: {}]   ;;  %s2233_s4 = inlined_call_operand.vmem [shape: f32[1,32], index: 4, kind: input, shape index: {}]   ;;  %s2234_s5 = inlined_call_operand.vmem [shape: f32[1,32], index: 5, kind: input, shape index: {}]   ;;  %s2235_s6 = inlined_call_operand.vmem [shape: f32[1,32], index: 6, kind: input, shape index: {}]   ;;  %s2236_s7 = inlined_call_operand.hbm [shape: bf16[32,64], index: 7, kind: input, shape index: {}]   ;;  %s2237_s8 = inlined_call_operand.vmem [shape: f32[1,64], index: 8, kind: input, shape index: {}]   ;;  %s2238_s9 = inlined_call_operand.vmem [shape: bf16[64,32], index: 9, kind: input, shape index: {}]   ;;  %s2239_s10 = inlined_call_operand.vmem [shape: f32[1,32], index: 10, kind: input, shape index: {}]   ;;  %s2240_s11 = inlined_call_operand.hbm [shape: f32[2,8,32], index: 11, kind: output, shape index: {}]  }
   0x1   :  { %17 = vsyncpa [#allocation4], 0  ;;  %s1860_s17 = smov [#allocation2]   ;;  %s1812_s21 = scalar_lea.hbm %s2236_s7, 256 }
   0x2   :  { %s37_s18 = sshll.u32 %s1860_s17, 4  ;;  %p1813_p0 = scmp.ne.s32.totalorder %s2236_s7, %s1812_s21  ;;  %s38_s18 = int_to_ptr.vmem [resolvable:$true] %s37_s18 }
   0x3   :  { %p1816_p1 = scmp.lt.u32.totalorder %s1812_s21, %s2236_s7 }
   0x5   :  { %p1818_p2 = pnand %p1816_p1, %p1813_p0 }
   0x7   :  { %1821 = shalt.err (!%p1818_p2)
}
   0x8   :  { %s1822_s26 = scalar_lea.vmem %s38_s18, 256  ;;  %p1827_p4 = scmp.lt.s32.totalorder %s38_s18, %s38_s18 }
   0x9   :  { %p1823_p3 = scmp.ne.s32.totalorder %s38_s18, %s1822_s26  ;;  %p1828_p5 = scmp.lt.s32.totalorder %s1822_s26, %s1822_s26 }
   0xb   :  { %p1829_p6 = por %p1828_p5, %p1827_p4 }
   0xd   :  { %p1830_p7 = pnand %p1829_p6, %p1823_p3 }
   0xf   :  { %1833 = shalt.err (!%p1830_p7)
}
  0x10   :  { %s1861_s27 = smov 64   ;;  %s1862_s28 = smov 4  }
  0x11   :  { %43 = dma.hbm_to_vmem [thread:$0]  %s2236_s7, 256, %s38_s18, [#allocation3], %s1861_s27, %s1861_s27, %s1862_s28  }
  0x12   :  { %1856 = dma.done.wait [#allocation3], 256  }
  0x13   :  { %1857 = vsyncadd [#allocation3], 4294967040  ;;  %v1863_v0 = vmov 0.0   ;;  %vm1864_vm0 = vmmov 0   ;;  %v1760_v1 = vld [vmem:[%s2230_s1] sm:$0xff]   ;;  %v1761_v2 = vld [vmem:[%s2230_s1 + $0x8] sm:$0xff]  }
  0x14   :  { %1594 = vmatprep.subr.bf16.mxu1 %v1863_v0  ;;  %1598 = vmatprep.mubr.msk.bf16.mxu1 %vm1864_vm0, %v1863_v0  ;;  %v1967_v3 = vld [vmem:[%s2229_s0] sm:$0xff]  ;;  %v1972_v4 = vld [vmem:[%s2229_s0 + $0x8] sm:$0xff]  ;;  %vm80_vm1 = vcmask 261120   ;;  %s1865_s0 = smov 96   ;;  %vm139_vm2 = vcmask 64512   ;;  %vm265_vm3 = vcmask 1043456  }
  0x15   :  { %1608 = vmatprep.subr.bf16.mxu0 %v1863_v0  ;;  %1610 = vmatprep.mubr.msk.bf16.mxu0 %vm1864_vm0, %v1863_v0  ;;  %v56_v5 = vpack.c.bf16 %v1972_v4, %v1967_v3  ;;  %v1502_v6 = vld [vmem:[%s2231_s2] ss:$0 sm:$0xff]  ;;  %s1866_s2 = smov 88   ;;  %s1867_s20 = smov 120   ;;  %vm1402_vm4 = vcmask 523264  }
  0x16   :  { %1595 = vmatpush3.bf16.msra.mxu1 %v1760_v1  ;;  %s1868_s21 = smov 56   ;;  %s1869_s22 = smov 112  }
  0x17   :  { %1596 = vmatprep.subr.bf16.mxu1 %v1863_v0  ;;  %s1870_s23 = smov 80   ;;  %s1871_s28 = smov 48  }
  0x18   :  { %s1872_s29 = smov 72   ;;  %s1873_s30 = smov 104  }
  0x19   :  { %s1874_s7 = smov 40  }
  0x1a   :  { %1597 = vmatpush3.bf16.msra.mxu1 %v1761_v2 }
  0x1b   :  { %1602 = vmatprep.subr.bf16.mxu1 %v1863_v0 }
  0x1d   :  { %1599 = vmatmul.mubr.msk.bf16.vlgmr.msra.gmra.mrb[0].mxu1 %vm80_vm1, %v56_v5 }
  0x1e   :  { %1604 = vmatprep.mubr.msk.bf16.mxu1 %vm1864_vm0, %v1863_v0 }
  0xf0   :  { %v118_v7 = vpop.f32.mrb[0].mxu1 }
  0xf1   :  { %v119_v8 = vadd.f32 %v1502_v6, %v118_v7  ;;  %v1600_v9 = vpop.f32.mrb[1].mxu1 }
  0xf2   :  { %v121_v10 = vpop.f32.mrb[2].mxu1 }
  0xf3   :  { %v1984_v11 = vpack.c.bf16 %v119_v8, %v119_v8  ;;  %v122_v12 = vadd.f32 %v1502_v6, %v121_v10  ;;  %v1601_v13 = vpop.f32.mrb[3].mxu1 }
  0xf5   :  { %137 = vrot.lane.b32.xlu0 %v1984_v11, %s1865_s0  ;;  %v1987_v14 = vpack.c.bf16 %v122_v12, %v122_v12 }
  0xf9   :  { %186 = vrot.lane.b32.xlu0 %v1987_v14, %s1865_s0 }
 0x167   :  { %v138_v15 = vpop.permute.xlu0 %137 }
 0x168   :  { %v144_v16 = vsel %vm139_vm2, %v138_v15, 0 }
 0x169   :  { %1603 = vmatpush3.bf16.xpose.msra.mxu1 %v144_v16 }
 0x16a   :  { %1614 = vmatprep.subr.bf16.mxu1 %v1863_v0 }
 0x16b   :  { %v187_v17 = vpop.permute.xlu0 %186 }
 0x16c   :  { %v192_v18 = vsel %vm139_vm2, %v187_v17, 0 }
 0x16d   :  { %1609 = vmatpush3.bf16.xpose.msra.mxu0 %v192_v18 }
 0x16e   :  { %1620 = vmatprep.subr.bf16.mxu0 %v1863_v0 }
 0x170   :  { %1605 = vmatmul.mubr.msk.bf16.vlgmr.msra.gmra.mrb[4].mxu1 %vm139_vm2, %v1984_v11 }
 0x171   :  { %1616 = vmatprep.mubr.msk.bf16.mxu1 %vm1864_vm0, %v1863_v0 }
 0x174   :  { %1611 = vmatmul.mubr.msk.bf16.vlgmr.msra.gmra.mrb[0].mxu0 %vm139_vm2, %v1987_v14 }
 0x175   :  { %1622 = vmatprep.mubr.msk.bf16.mxu0 %vm1864_vm0, %v1863_v0 }
 0x243   :  { %v180_v19 = vpop.f32.mrb[4].mxu1 }
 0x244   :  { %v234_v20 = vmul.f32 0.35355338, %v180_v19  ;;  %v1606_v21 = vpop.f32.mrb[5].mxu1 }
 0x245   :  { %v183_v22 = vpop.f32.mrb[6].mxu1 }
 0x246   :  { %v1607_v23 = vpop.f32.mrb[7].mxu1  ;;  %v236_v24 = vsel %vm139_vm2, %v234_v20, -inf }
 0x247   :  { %v228_v25 = vpop.f32.mrb[0].mxu0  ;;  %237 = vmax.xlane.f32.xlu1 %v236_v24 }
 0x248   :  { %v235_v26 = vmul.f32 0.35355338, %v228_v25  ;;  %v1612_v27 = vpop.f32.mrb[1].mxu0 }
 0x249   :  { %v231_v28 = vpop.f32.mrb[2].mxu0 }
 0x24a   :  { %v1613_v29 = vpop.f32.mrb[3].mxu0  ;;  %v239_v30 = vsel %vm139_vm2, %v235_v26, -inf }
 0x24b   :  { %240 = vmax.xlane.f32.xlu1 %v239_v30 }
 0x25c   :  { %260 = vrot.lane.b32.xlu1 %v1984_v11, %s1861_s27 }
 0x260   :  { %309 = vrot.lane.b32.xlu1 %v1987_v14, %s1861_s27 }
 0x264   :  { %360 = vrot.lane.b32.xlu1 %v1984_v11, %s1866_s2 }
 0x2d4   :  { %v238_v31 = vpop.xlane.xlu1 %237 }
 0x2d5   :  { %v242_v32 = vsub.f32 %v234_v20, %v238_v31 }
 0x2d7   :  { %v244_v33 = vmul.f32 1.442695, %v242_v32 }
 0x2d8   :  { %v241_v34 = vpop.xlane.xlu1 %240 }
 0x2d9   :  { %1768 = vpow2.f32 %v244_v33  ;;  %v243_v35 = vsub.f32 %v235_v26, %v241_v34 }
 0x2db   :  { %v246_v36 = vmul.f32 1.442695, %v243_v35 }
 0x2dc   :  { %v261_v37 = vpop.permute.xlu1 %260 }
 0x2dd   :  { %1770 = vpow2.f32 %v246_v36  ;;  %v267_v38 = vsel %vm265_vm3, %v261_v37, 0 }
 0x2de   :  { %1615 = vmatpush3.bf16.msra.mxu1 %v267_v38  ;;  %v134_v38 = vld [vmem:[%s2232_s3 + $0x4] sm:$0xf] }
 0x2df   :  { %1626 = vmatprep.subr.bf16.mxu1 %v1863_v0 }
 0x2e0   :  { %v310_v39 = vpop.permute.xlu1 %309 }
 0x2e1   :  { %v315_v40 = vsel %vm265_vm3, %v310_v39, 0 }
 0x2e2   :  { %1621 = vmatpush3.bf16.msra.mxu0 %v315_v40 }
 0x2e3   :  { %v1769_v41 = vpop.eup %1768  ;;  %1632 = vmatprep.subr.bf16.mxu0 %v1863_v0 }
 0x2e4   :  { %v248_v42 = vsel %vm139_vm2, %v1769_v41, 0.0  ;;  %v361_v45 = vpop.permute.xlu1 %360 }
 0x2e5   :  { %249 = vadd.xlane.f32.xlu0 %v248_v42  ;;  %v366_v52 = vsel %vm139_vm2, %v361_v45, 0 }
 0x2e7   :  { %v1771_v43 = vpop.eup %1770 }
 0x2e8   :  { %v251_v44 = vsel %vm139_vm2, %v1771_v43, 0.0 }
 0x2e9   :  { %252 = vadd.xlane.f32.xlu1 %v251_v44 }
 0x2fa   :  { %410 = vrot.lane.b32.xlu1 %v1987_v14, %s1866_s2 }
 0x2fb   :  { %358 = vrot.lane.b32.xlu0 %v1984_v11, %s1867_s20 }
 0x2fe   :  { %408 = vrot.lane.b32.xlu1 %v1987_v14, %s1867_s20 }
 0x372   :  { %v250_v46 = vpop.xlane.xlu0 %249 }
 0x373   :  { %1772 = vrcp.f32 %v250_v46 }
 0x376   :  { %v253_v47 = vpop.xlane.xlu1 %252  ;;  %v359_v57 = vpop.permute.xlu0 %358 }
 0x377   :  { %1774 = vrcp.f32 %v253_v47 }
 0x37a   :  { %v411_v54 = vpop.permute.xlu1 %410 }
 0x37b   :  { %v416_v56 = vsel %vm139_vm2, %v411_v54, 0 }
 0x37d   :  { %v1773_v48 = vpop.eup %1772 }
 0x37e   :  { %v256_v49 = vmul.f32 %v1773_v48, %v1769_v41  ;;  %v409_v58 = vpop.permute.xlu1 %408  ;;  %v585_v41 = vsel %vm265_vm3, %v134_v38, 0 }
 0x380   :  { %v258_v50 = vpack.c.bf16 %v256_v49, %v256_v49 }
 0x381   :  { %v1775_v51 = vpop.eup %1774 }
 0x382   :  { %v257_v53 = vmul.f32 %v1775_v51, %v1771_v43  ;;  %1617 = vmatmul.mubr.msk.bf16.vlgmr.msra.gmra.mrb[8].mxu1 %vm139_vm2, %v258_v50  ;;  %v133_v43 = vld [vmem:[%s2232_s3] sm:$0xf] }
 0x383   :  { %1627 = vmatpush3.bf16.xpose.msra.mxu1 %v366_v52  ;;  %1628 = vmatprep.mubr.msk.bf16.mxu1 %vm1864_vm0, %v1863_v0  ;;  %v632_v46 = vsel %vm265_vm3, %v133_v43, 0 }
 0x384   :  { %v259_v55 = vpack.c.bf16 %v257_v53, %v257_v53  ;;  %1638 = vmatprep.subr.bf16.mxu1 %v1863_v0 }
 0x386   :  { %1623 = vmatmul.mubr.msk.bf16.vlgmr.msra.gmra.mrb[4].mxu0 %vm139_vm2, %v259_v55 }
 0x387   :  { %1633 = vmatpush3.bf16.xpose.msra.mxu0 %v416_v56  ;;  %1634 = vmatprep.mubr.msk.bf16.mxu0 %vm1864_vm0, %v1863_v0 }
 0x388   :  { %1644 = vmatprep.subr.bf16.mxu0 %v1863_v0 }
 0x38a   :  { %1629 = vmatmul.mubr.msk.bf16.vlgmr.msra.gmra.mrb[12].mxu1 %vm139_vm2, %v359_v57 }
 0x38b   :  { %1640 = vmatprep.mubr.msk.bf16.mxu1 %vm1864_vm0, %v1863_v0 }
 0x38e   :  { %1635 = vmatmul.mubr.msk.bf16.vlgmr.msra.gmra.mrb[8].mxu0 %vm139_vm2, %v409_v58 }
 0x38f   :  { %1646 = vmatprep.mubr.msk.bf16.mxu0 %vm1864_vm0, %v1863_v0 }
 0x455   :  { %v2034_v59 = vpop.f32.mrb[8].mxu1 }
 0x456   :  { %v1618_v60 = vpop.f32.mrb[9].mxu1 }
 0x457   :  { %v306_v61 = vpop.f32.mrb[10].mxu1 }
 0x458   :  { %v1619_v62 = vpop.f32.mrb[11].mxu1 }
 0x459   :  { %v2036_v63 = vpop.f32.mrb[4].mxu0 }
 0x45a   :  { %v357_v1 = vpack.c.bf16 %v2036_v63, %v2034_v59  ;;  %v1624_v2 = vpop.f32.mrb[5].mxu0 }
 0x45b   :  { %v354_v5 = vpop.f32.mrb[6].mxu0 }
 0x45c   :  { %v1625_v6 = vpop.f32.mrb[7].mxu0 }
 0x45d   :  { %v402_v7 = vpop.f32.mrb[12].mxu1 }
 0x45e   :  { %v458_v8 = vmul.f32 0.35355338, %v402_v7  ;;  %v1630_v9 = vpop.f32.mrb[13].mxu1 }
 0x45f   :  { %v405_v10 = vpop.f32.mrb[14].mxu1 }
 0x460   :  { %v1631_v12 = vpop.f32.mrb[15].mxu1  ;;  %v460_v13 = vsel %vm139_vm2, %v458_v8, -inf }
 0x461   :  { %v452_v15 = vpop.f32.mrb[8].mxu0  ;;  %461 = vmax.xlane.f32.xlu1 %v460_v13 }
 0x462   :  { %v459_v16 = vmul.f32 0.35355338, %v452_v15  ;;  %v1636_v17 = vpop.f32.mrb[9].mxu0 }
 0x463   :  { %v455_v18 = vpop.f32.mrb[10].mxu0 }
 0x464   :  { %v1637_v19 = vpop.f32.mrb[11].mxu0  ;;  %v463_v20 = vsel %vm139_vm2, %v459_v16, -inf }
 0x465   :  { %464 = vmax.xlane.f32.xlu0 %v463_v20 }
 0x47b   :  { %532 = vrot.lane.b32.xlu0 %v1987_v14, %s1868_s21 }
 0x47f   :  { %675 = vrot.lane.b32.xlu0 %v1984_v11, %s1869_s22 }
 0x4ee   :  { %v462_v21 = vpop.xlane.xlu1 %461 }
 0x4ef   :  { %v466_v22 = vsub.f32 %v458_v8, %v462_v21 }
 0x4f1   :  { %v468_v23 = vmul.f32 1.442695, %v466_v22 }
 0x4f2   :  { %v465_v24 = vpop.xlane.xlu0 %464 }
 0x4f3   :  { %1776 = vpow2.f32 %v468_v23  ;;  %v467_v25 = vsub.f32 %v459_v16, %v465_v24 }
 0x4f5   :  { %v470_v26 = vmul.f32 1.442695, %v467_v25 }
 0x4f6   :  { %v533_v27 = vpop.permute.xlu0 %532 }
 0x4f7   :  { %1778 = vpow2.f32 %v470_v26  ;;  %v538_v28 = vsel %vm265_vm3, %v533_v27, 0 }
 0x4f8   :  { %1645 = vmatpush3.bf16.msra.mxu0 %v538_v28 }
 0x4f9   :  { %1656 = vmatprep.subr.bf16.mxu0 %v1863_v0 }
 0x4fa   :  { %v676_v63 = vpop.permute.xlu0 %675 }
 0x4fd   :  { %v1777_v29 = vpop.eup %1776 }
 0x4fe   :  { %v472_v30 = vsel %vm139_vm2, %v1777_v29, 0.0 }
 0x4ff   :  { %473 = vadd.xlane.f32.xlu1 %v472_v30 }
 0x501   :  { %v1779_v31 = vpop.eup %1778 }
 0x502   :  { %v475_v32 = vsel %vm139_vm2, %v1779_v31, 0.0 }
 0x503   :  { %476 = vadd.xlane.f32.xlu1 %v475_v32 }
 0x514   :  { %484 = vrot.lane.b32.xlu1 %v1984_v11, %s1868_s21 }
 0x518   :  { %677 = vrot.lane.b32.xlu1 %v1984_v11, %s1870_s23 }
 0x51c   :  { %727 = vrot.lane.b32.xlu1 %v1987_v14, %s1870_s23 }
 0x520   :  { %725 = vrot.lane.b32.xlu1 %v1987_v14, %s1869_s22 }
 0x58c   :  { %v474_v33 = vpop.xlane.xlu1 %473 }
 0x58d   :  { %1780 = vrcp.f32 %v474_v33 }
 0x590   :  { %v477_v34 = vpop.xlane.xlu1 %476 }
 0x591   :  { %1782 = vrcp.f32 %v477_v34 }
 0x594   :  { %v485_v35 = vpop.permute.xlu1 %484 }
 0x595   :  { %v490_v36 = vsel %vm265_vm3, %v485_v35, 0 }
 0x596   :  { %1639 = vmatpush3.bf16.msra.mxu1 %v490_v36 }
 0x597   :  { %v1781_v37 = vpop.eup %1780  ;;  %1650 = vmatprep.subr.bf16.mxu1 %v1863_v0 }
 0x598   :  { %v480_v39 = vmul.f32 %v1781_v37, %v1777_v29  ;;  %v678_v47 = vpop.permute.xlu1 %677 }
 0x599   :  { %v683_v59 = vsel %vm139_vm2, %v678_v47, 0 }
 0x59a   :  { %v482_v40 = vpack.c.bf16 %v480_v39, %v480_v39 }
 0x59b   :  { %v1783_v42 = vpop.eup %1782 }
 0x59c   :  { %v481_v44 = vmul.f32 %v1783_v42, %v1779_v31  ;;  %1641 = vmatmul.mubr.msk.bf16.vlgmr.msra.gmra.mrb[16].mxu1 %vm139_vm2, %v482_v40  ;;  %v728_v48 = vpop.permute.xlu1 %727 }
 0x59d   :  { %1651 = vmatpush3.bf16.msra.mxu1 %v585_v41  ;;  %1652 = vmatprep.mubr.msk.bf16.mxu1 %vm1864_vm0, %v1863_v0  ;;  %v733_v49 = vsel %vm139_vm2, %v728_v48, 0 }
 0x59e   :  { %v483_v45 = vpack.c.bf16 %v481_v44, %v481_v44  ;;  %1662 = vmatprep.subr.bf16.mxu1 %v1863_v0 }
 0x5a0   :  { %1647 = vmatmul.mubr.msk.bf16.vlgmr.msra.gmra.mrb[12].mxu0 %vm139_vm2, %v483_v45  ;;  %v726_v50 = vpop.permute.xlu1 %725 }
 0x5a1   :  { %1657 = vmatpush3.bf16.msra.mxu0 %v632_v46  ;;  %1658 = vmatprep.mubr.msk.bf16.mxu0 %vm1864_vm0, %v1863_v0 }
 0x5a2   :  { %1668 = vmatprep.subr.bf16.mxu0 %v1863_v0 }
 0x5a8   :  { %1659 = vmatmul.mubr.msk.bf16.vlgmr.msra.gmra.mrb[16].mxu0 %vm139_vm2, %v357_v1 }
 0x5a9   :  { %1670 = vmatprep.mubr.msk.bf16.mxu0 %vm1864_vm0, %v1863_v0 }
 0x5aa   :  { %1669 = vmatpush3.bf16.xpose.msra.mxu0 %v733_v49 }
 0x5ab   :  { %1680 = vmatprep.subr.bf16.mxu0 %v1863_v0 }
 0x5b1   :  { %1671 = vmatmul.mubr.msk.bf16.vlgmr.msra.gmra.mrb[20].mxu0 %vm139_vm2, %v726_v50  ;;  %v135_v50 = vld [vmem:[%s2232_s3 + $0x8] sm:$0xf] }
 0x5b2   :  { %1682 = vmatprep.mubr.msk.bf16.mxu0 %vm1864_vm0, %v1863_v0 }
 0x66f   :  { %v526_v51 = vpop.f32.mrb[16].mxu1 }
 0x670   :  { %v1642_v52 = vpop.f32.mrb[17].mxu1 }
 0x671   :  { %v529_v53 = vpop.f32.mrb[18].mxu1 }
 0x672   :  { %v1643_v54 = vpop.f32.mrb[19].mxu1 }
 0x673   :  { %v574_v55 = vpop.f32.mrb[12].mxu0 }
 0x674   :  { %v580_v56 = vpack.c.bf16 %v574_v55, %v526_v51  ;;  %v1648_v57 = vpop.f32.mrb[13].mxu0  ;;  %v902_v51 = vsel %vm265_vm3, %v135_v50, 0 }
 0x675   :  { %v577_v58 = vpop.f32.mrb[14].mxu0 }
 0x676   :  { %v1649_v60 = vpop.f32.mrb[15].mxu0  ;;  %1653 = vmatmul.mubr.msk.bf16.vlgmr.msra.gmra.mrb[20].mxu1 %vm139_vm2, %v580_v56 }
 0x677   :  { %1663 = vmatpush3.bf16.xpose.msra.mxu1 %v683_v59  ;;  %1664 = vmatprep.mubr.msk.bf16.mxu1 %vm1864_vm0, %v1863_v0 }
 0x678   :  { %1674 = vmatprep.subr.bf16.mxu1 %v1863_v0 }
 0x67b   :  { %v668_v61 = vpop.f32.mrb[16].mxu0 }
 0x67c   :  { %v1660_v62 = vpop.f32.mrb[17].mxu0 }
 0x67d   :  { %v671_v1 = vpop.f32.mrb[18].mxu0 }
 0x67e   :  { %v1661_v2 = vpop.f32.mrb[19].mxu0  ;;  %1665 = vmatmul.mubr.msk.bf16.vlgmr.msra.gmra.mrb[24].mxu1 %vm139_vm2, %v676_v63 }
 0x67f   :  { %1676 = vmatprep.mubr.msk.bf16.mxu1 %vm1864_vm0, %v1863_v0 }
 0x684   :  { %v769_v5 = vpop.f32.mrb[20].mxu0 }
 0x685   :  { %v776_v6 = vmul.f32 0.35355338, %v769_v5  ;;  %v1672_v7 = vpop.f32.mrb[21].mxu0 }
 0x686   :  { %v772_v8 = vpop.f32.mrb[22].mxu0 }
 0x687   :  { %v1673_v9 = vpop.f32.mrb[23].mxu0  ;;  %v780_v10 = vsel %vm139_vm2, %v776_v6, -inf }
 0x688   :  { %781 = vmax.xlane.f32.xlu1 %v780_v10 }
 0x699   :  { %801 = vrot.lane.b32.xlu1 %v1984_v11, %s1871_s28 }
 0x69d   :  { %949 = vrot.lane.b32.xlu1 %v1984_v11, %s1872_s29 }
 0x6a1   :  { %999 = vrot.lane.b32.xlu1 %v1987_v14, %s1872_s29 }
 0x6a5   :  { %997 = vrot.lane.b32.xlu1 %v1987_v14, %s1873_s30 }
 0x715   :  { %v782_v12 = vpop.xlane.xlu1 %781 }
 0x716   :  { %v784_v16 = vsub.f32 %v776_v6, %v782_v12 }
 0x718   :  { %v787_v17 = vmul.f32 1.442695, %v784_v16 }
 0x719   :  { %v802_v13 = vpop.permute.xlu1 %801 }
 0x71a   :  { %v807_v15 = vsel %vm265_vm3, %v802_v13, 0  ;;  %1784 = vpow2.f32 %v787_v17 }
 0x71b   :  { %1675 = vmatpush3.bf16.msra.mxu1 %v807_v15 }
 0x71c   :  { %1686 = vmatprep.subr.bf16.mxu1 %v1863_v0 }
 0x71d   :  { %v950_v45 = vpop.permute.xlu1 %949 }
 0x71e   :  { %v955_v47 = vsel %vm139_vm2, %v950_v45, 0 }
 0x721   :  { %v1000_v56 = vpop.permute.xlu1 %999 }
 0x724   :  { %v1785_v30 = vpop.eup %1784 }
 0x725   :  { %v792_v31 = vsel %vm139_vm2, %v1785_v30, 0.0  ;;  %v998_v8 = vpop.permute.xlu1 %997 }
 0x749   :  { %v621_v18 = vpop.f32.mrb[20].mxu1 }
 0x74a   :  { %v2098_v19 = vadd.f32 %v668_v61, %v621_v18  ;;  %v1654_v20 = vpop.f32.mrb[21].mxu1  ;;  %v1005_v61 = vsel %vm139_vm2, %v1000_v56, 0 }
 0x74b   :  { %v624_v21 = vpop.f32.mrb[22].mxu1 }
 0x74c   :  { %v2100_v22 = vadd.f32 %v671_v1, %v624_v21  ;;  %v1655_v23 = vpop.f32.mrb[23].mxu1 }
 0x751   :  { %v719_v24 = vpop.f32.mrb[24].mxu1 }
 0x752   :  { %v775_v25 = vmul.f32 0.35355338, %v719_v24  ;;  %v1666_v26 = vpop.f32.mrb[25].mxu1 }
 0x753   :  { %v722_v27 = vpop.f32.mrb[26].mxu1 }
 0x754   :  { %v1667_v28 = vpop.f32.mrb[27].mxu1  ;;  %v777_v29 = vsel %vm139_vm2, %v775_v25, -inf }
 0x755   :  { %778 = vmax.xlane.f32.xlu0 %v777_v29 }
 0x759   :  { %793 = vadd.xlane.f32.xlu0 %v792_v31 }
 0x7e2   :  { %v779_v32 = vpop.xlane.xlu0 %778 }
 0x7e3   :  { %v783_v33 = vsub.f32 %v775_v25, %v779_v32 }
 0x7e5   :  { %v785_v34 = vmul.f32 1.442695, %v783_v33 }
 0x7e6   :  { %v794_v37 = vpop.xlane.xlu0 %793 }
 0x7e7   :  { %1786 = vpow2.f32 %v785_v34 }
 0x7e8   :  { %1788 = vrcp.f32 %v794_v37 }
 0x7f1   :  { %v1787_v35 = vpop.eup %1786 }
 0x7f2   :  { %v789_v36 = vsel %vm139_vm2, %v1787_v35, 0.0  ;;  %v1789_v38 = vpop.eup %1788 }
 0x7f3   :  { %790 = vadd.xlane.f32.xlu0 %v789_v36  ;;  %v798_v40 = vmul.f32 %v1789_v38, %v1785_v30  ;;  %v136_v38 = vld [vmem:[%s2232_s3 + $0xc] sm:$0xf] }
 0x7f5   :  { %v800_v43 = vpack.c.bf16 %v798_v40, %v798_v40 }
 0x809   :  { %849 = vrot.lane.b32.xlu0 %v1987_v14, %s1871_s28 }
 0x80d   :  { %947 = vrot.lane.b32.xlu0 %v1984_v11, %s1873_s30 }
 0x880   :  { %v791_v39 = vpop.xlane.xlu0 %790 }
 0x881   :  { %1790 = vrcp.f32 %v791_v39  ;;  %v1174_v39 = vsel %vm265_vm3, %v136_v38, 0  ;;  %v1764_v38 = vld [vmem:[%s2238_s9] sm:$0xff]  }
 0x884   :  { %v850_v41 = vpop.permute.xlu0 %849 }
 0x885   :  { %v855_v42 = vsel %vm265_vm3, %v850_v41, 0 }
 0x886   :  { %1681 = vmatpush3.bf16.msra.mxu0 %v855_v42 }
 0x887   :  { %1692 = vmatprep.subr.bf16.mxu0 %v1863_v0 }
 0x888   :  { %v948_v49 = vpop.permute.xlu0 %947 }
 0x889   :  { %1683 = vmatmul.mubr.msk.bf16.vlgmr.msra.gmra.mrb[24].mxu0 %vm139_vm2, %v800_v43 }
 0x88a   :  { %1694 = vmatprep.mubr.msk.bf16.mxu0 %vm1864_vm0, %v1863_v0 }
 0x88b   :  { %v1791_v44 = vpop.eup %1790 }
 0x88c   :  { %v797_v46 = vmul.f32 %v1791_v44, %v1787_v35 }
 0x88e   :  { %v799_v48 = vpack.c.bf16 %v797_v46, %v797_v46 }
 0x88f   :  { %1693 = vmatpush3.bf16.xpose.msra.mxu0 %v955_v47 }
 0x890   :  { %1677 = vmatmul.mubr.msk.bf16.vlgmr.msra.gmra.mrb[28].mxu1 %vm139_vm2, %v799_v48  ;;  %1704 = vmatprep.subr.bf16.mxu0 %v1863_v0 }
 0x891   :  { %1688 = vmatprep.mubr.msk.bf16.mxu1 %vm1864_vm0, %v1863_v0  ;;  %1687 = vmatpush3.bf16.msra.mxu1 %v902_v51 }
 0x892   :  { %1698 = vmatprep.subr.bf16.mxu1 %v1863_v0 }
 0x896   :  { %1695 = vmatmul.mubr.msk.bf16.vlgmr.msra.gmra.mrb[28].mxu0 %vm139_vm2, %v948_v49 }
 0x897   :  { %1706 = vmatprep.mubr.msk.bf16.mxu0 %vm1864_vm0, %v1863_v0 }
 0x95c   :  { %v891_v52 = vpop.f32.mrb[24].mxu0 }
 0x95d   :  { %v1684_v53 = vpop.f32.mrb[25].mxu0 }
 0x95e   :  { %v894_v54 = vpop.f32.mrb[26].mxu0 }
 0x95f   :  { %v1685_v55 = vpop.f32.mrb[27].mxu0 }
 0x960   :  { %v1528_v55 = vld [vmem:[%s2233_s4] ss:$0 sm:$0xff] }
 0x963   :  { %v843_v57 = vpop.f32.mrb[28].mxu1 }
 0x964   :  { %v897_v58 = vpack.c.bf16 %v891_v52, %v843_v57  ;;  %v1678_v59 = vpop.f32.mrb[29].mxu1 }
 0x965   :  { %v846_v60 = vpop.f32.mrb[30].mxu1 }
 0x966   :  { %v1679_v62 = vpop.f32.mrb[31].mxu1  ;;  %1689 = vmatmul.mubr.msk.bf16.vlgmr.msra.gmra.mrb[32].mxu1 %vm139_vm2, %v897_v58 }
 0x967   :  { %1699 = vmatpush3.bf16.xpose.msra.mxu1 %v1005_v61  ;;  %1700 = vmatprep.mubr.msk.bf16.mxu1 %vm1864_vm0, %v1863_v0 }
 0x968   :  { %1710 = vmatprep.subr.bf16.mxu1 %v1863_v0 }
 0x969   :  { %v991_v63 = vpop.f32.mrb[28].mxu0 }
 0x96a   :  { %v1047_v1 = vmul.f32 0.35355338, %v991_v63  ;;  %v1696_v2 = vpop.f32.mrb[29].mxu0 }
 0x96b   :  { %v994_v5 = vpop.f32.mrb[30].mxu0 }
 0x96c   :  { %v1697_v6 = vpop.f32.mrb[31].mxu0  ;;  %v1049_v7 = vsel %vm139_vm2, %v1047_v1, -inf }
 0x96d   :  { %1050 = vmax.xlane.f32.xlu0 %v1049_v7 }
 0x96e   :  { %1701 = vmatmul.mubr.msk.bf16.vlgmr.msra.gmra.mrb[36].mxu1 %vm139_vm2, %v998_v8 }
 0x96f   :  { %1712 = vmatprep.mubr.msk.bf16.mxu1 %vm1864_vm0, %v1863_v0 }
 0x9fa   :  { %v1051_v9 = vpop.xlane.xlu0 %1050 }
 0x9fb   :  { %v1055_v10 = vsub.f32 %v1047_v1, %v1051_v9 }
 0x9fd   :  { %v1057_v12 = vmul.f32 1.442695, %v1055_v10  ;;  %v1762_v10 = vld [vmem:[#allocation2] sm:$0xff]  }
 0x9ff   :  { %1792 = vpow2.f32 %v1057_v12 }
 0xa09   :  { %v1793_v13 = vpop.eup %1792 }
 0xa0a   :  { %v1061_v15 = vsel %vm139_vm2, %v1793_v13, 0.0 }
 0xa0b   :  { %1062 = vadd.xlane.f32.xlu0 %v1061_v15 }
 0xa39   :  { %v938_v16 = vpop.f32.mrb[32].mxu1 }
 0xa3a   :  { %v945_v17 = vadd.f32 %v938_v16, %v2098_v19  ;;  %v1690_v18 = vpop.f32.mrb[33].mxu1 }
 0xa3b   :  { %v941_v20 = vpop.f32.mrb[34].mxu1 }
 0xa3c   :  { %v946_v21 = vadd.f32 %v941_v20, %v2100_v22  ;;  %v1691_v23 = vpop.f32.mrb[35].mxu1 }
 0xa41   :  { %v1041_v24 = vpop.f32.mrb[36].mxu1 }
 0xa42   :  { %v1048_v25 = vmul.f32 0.35355338, %v1041_v24  ;;  %v1702_v26 = vpop.f32.mrb[37].mxu1 }
 0xa43   :  { %v1044_v27 = vpop.f32.mrb[38].mxu1 }
 0xa44   :  { %v1703_v28 = vpop.f32.mrb[39].mxu1  ;;  %v1052_v29 = vsel %vm139_vm2, %v1048_v25, -inf }
 0xa45   :  { %1053 = vmax.xlane.f32.xlu1 %v1052_v29 }
 0xa56   :  { %1073 = vrot.lane.b32.xlu1 %v1984_v11, %s1874_s7 }
 0xa98   :  { %v1063_v30 = vpop.xlane.xlu0 %1062 }
 0xa99   :  { %1794 = vrcp.f32 %v1063_v30  ;;  %v2174_v30 = vld [vmem:[%s2234_s5] ss:$0 sm:$0xff] }
 0xaa3   :  { %v1795_v31 = vpop.eup %1794 }
 0xaa4   :  { %v1069_v33 = vmul.f32 %v1795_v31, %v1793_v13 }
 0xaa6   :  { %v1071_v36 = vpack.c.bf16 %v1069_v33, %v1069_v33 }
 0xad2   :  { %v1054_v19 = vpop.xlane.xlu1 %1053 }
 0xad3   :  { %v1056_v32 = vsub.f32 %v1048_v25, %v1054_v19 }
 0xad5   :  { %v1059_v34 = vmul.f32 1.442695, %v1056_v32 }
 0xad6   :  { %v1074_v22 = vpop.permute.xlu1 %1073 }
 0xad7   :  { %1796 = vpow2.f32 %v1059_v34  ;;  %v1079_v35 = vsel %vm265_vm3, %v1074_v22, 0  ;;  %v2180_v22 = vld [vmem:[%s2235_s6] ss:$0 sm:$0xff] }
 0xad8   :  { %1705 = vmatpush3.bf16.msra.mxu0 %v1079_v35 }
 0xad9   :  { %1716 = vmatprep.subr.bf16.mxu0 %v1863_v0 }
 0xadb   :  { %1707 = vmatmul.mubr.msk.bf16.vlgmr.msra.gmra.mrb[32].mxu0 %vm139_vm2, %v1071_v36 }
 0xadc   :  { %1718 = vmatprep.mubr.msk.bf16.mxu0 %vm1864_vm0, %v1863_v0  ;;  %1717 = vmatpush3.bf16.msra.mxu0 %v1174_v39  ;;  %v1765_v39 = vld [vmem:[%s2238_s9 + $0x8] sm:$0xff]  }
 0xadd   :  { %1730 = vmatprep.subr.bf16.mxu0 %v1863_v0 }
 0xae1   :  { %v1797_v11 = vpop.eup %1796 }
 0xae2   :  { %v1064_v37 = vsel %vm139_vm2, %v1797_v11, 0.0 }
 0xae3   :  { %1065 = vadd.xlane.f32.xlu0 %v1064_v37 }
 0xaf9   :  { %1121 = vrot.lane.b32.xlu0 %v1987_v14, %s1874_s7 }
 0xb70   :  { %v1066_v40 = vpop.xlane.xlu0 %1065 }
 0xb71   :  { %1798 = vrcp.f32 %v1066_v40  ;;  %v1766_v40 = vld [vmem:[%s2238_s9 + $0x10] sm:$0xff]  }
 0xb74   :  { %v1122_v41 = vpop.permute.xlu0 %1121 }
 0xb75   :  { %v1127_v42 = vsel %vm265_vm3, %v1122_v41, 0  ;;  %v1767_v41 = vld [vmem:[%s2238_s9 + $0x18] sm:$0xff]  }
 0xb76   :  { %1711 = vmatpush3.bf16.msra.mxu1 %v1127_v42  ;;  %v1531_v42 = vld [vmem:[%s2237_s8] ss:$0 sm:$0xff] }
 0xb77   :  { %1722 = vmatprep.subr.bf16.mxu1 %v1863_v0 }
 0xb7b   :  { %v1799_v43 = vpop.eup %1798 }
 0xb7c   :  { %v1070_v44 = vmul.f32 %v1799_v43, %v1797_v11 }
 0xb7e   :  { %v1072_v14 = vpack.c.bf16 %v1070_v44, %v1070_v44 }
 0xb80   :  { %1713 = vmatmul.mubr.msk.bf16.vlgmr.msra.gmra.mrb[40].mxu1 %vm139_vm2, %v1072_v14 }
 0xb81   :  { %1726 = vmatprep.mubr.msk.bf16.mxu1 %vm1864_vm0, %v1863_v0  ;;  %1723 = vmatpush3.bf16.msra.mxu1 %v1762_v10 }
 0xb82   :  { %1724 = vmatprep.subr.bf16.mxu1 %v1863_v0 }
 0xbae   :  { %v1115_v45 = vpop.f32.mrb[32].mxu0 }
 0xbaf   :  { %v1708_v46 = vpop.f32.mrb[33].mxu0 }
 0xbb0   :  { %v1118_v47 = vpop.f32.mrb[34].mxu0 }
 0xbb1   :  { %v1709_v48 = vpop.f32.mrb[35].mxu0 }
 0xc53   :  { %v1163_v49 = vpop.f32.mrb[40].mxu1 }
 0xc54   :  { %v1169_v50 = vpack.c.bf16 %v1163_v49, %v1115_v45  ;;  %v1714_v51 = vpop.f32.mrb[41].mxu1 }
 0xc55   :  { %v1166_v52 = vpop.f32.mrb[42].mxu1 }
 0xc56   :  { %v1715_v53 = vpop.f32.mrb[43].mxu1  ;;  %1719 = vmatmul.mubr.msk.bf16.vlgmr.msra.gmra.mrb[36].mxu0 %vm139_vm2, %v1169_v50 }
 0xc57   :  { %1738 = vmatprep.mubr.msk.bf16.mxu0 %vm1864_vm0, %v1863_v0  ;;  %1731 = vmatpush3.bf16.msra.mxu0 %v1764_v38 }
 0xc58   :  { %1732 = vmatprep.subr.bf16.mxu0 %v1863_v0 }
 0xc5b   :  { %1733 = vmatpush3.bf16.msra.mxu0 %v1765_v39 }
 0xc5c   :  { %1734 = vmatprep.subr.bf16.mxu0 %v1863_v0 }
 0xc5f   :  { %1735 = vmatpush3.bf16.msra.mxu0 %v1766_v40 }
 0xc60   :  { %1736 = vmatprep.subr.bf16.mxu0 %v1863_v0 }
 0xc63   :  { %1737 = vmatpush3.bf16.msra.mxu0 %v1767_v41 }
 0xd29   :  { %v1210_v54 = vpop.f32.mrb[36].mxu0 }
 0xd2a   :  { %v1217_v56 = vadd.f32 %v1210_v54, %v945_v17  ;;  %v1720_v57 = vpop.f32.mrb[37].mxu0 }
 0xd2b   :  { %v1213_v58 = vpop.f32.mrb[38].mxu0 }
 0xd2c   :  { %v1226_v59 = vadd.f32 %v1528_v55, %v1217_v56  ;;  %v1218_v60 = vadd.f32 %v1213_v58, %v946_v21  ;;  %v1721_v61 = vpop.f32.mrb[39].mxu0 }
 0xd2e   :  { %v1228_v62 = vadd.f32 %v1226_v59, %v1967_v3  ;;  %v1227_v63 = vadd.f32 %v1528_v55, %v1218_v60  ;;  %v1763_v3 = vld [vmem:[#allocation2 + $0x8] sm:$0xff]  }
 0xd2f   :  { %1725 = vmatpush3.bf16.msra.mxu1 %v1763_v3 }
 0xd30   :  { %v1229_v1 = vadd.f32 %v1227_v63, %v1972_v4  ;;  %v1230_v2 = vsel %vm80_vm1, %v1228_v62, 0.0  ;;  %v1238_v5 = vmul.f32 %v1228_v62, %v1228_v62 }
 0xd31   :  { %1231 = vadd.xlane.f32.xlu1 %v1230_v2 }
 0xd32   :  { %v1233_v6 = vsel %vm80_vm1, %v1229_v1, 0.0  ;;  %v1239_v7 = vmul.f32 %v1229_v1, %v1229_v1  ;;  %v1240_v8 = vsel %vm80_vm1, %v1238_v5, 0.0  ;;  %v1535_v5 = vld [vmem:[%s2239_s10] ss:$0 sm:$0xff]  ;;  %s1875_s10 = smov [#allocation5]  }
 0xd33   :  { %1234 = vadd.xlane.f32.xlu0 %v1233_v6  ;;  %s1490_s25 = sshll.u32 %s1875_s10, 4  ;;  %s1491_s25 = int_to_ptr.vmem [resolvable:$true] %s1490_s25 }
 0xd34   :  { %v1243_v9 = vsel %vm80_vm1, %v1239_v7, 0.0  ;;  %s1834_s26 = scalar_lea.vmem %s1491_s25, 256  ;;  %p1839_p9 = scmp.lt.s32.totalorder %s1491_s25, %s1491_s25 }
 0xd35   :  { %1241 = vadd.xlane.f32.xlu1 %v1240_v8  ;;  %p1835_p8 = scmp.ne.s32.totalorder %s1491_s25, %s1834_s26  ;;  %p1840_p10 = scmp.lt.s32.totalorder %s1834_s26, %s1834_s26 }
 0xd37   :  { %1244 = vadd.xlane.f32.xlu0 %v1243_v9  ;;  %p1841_p11 = por %p1840_p10, %p1839_p9 }
 0xd39   :  { %p1842_p12 = pnand %p1841_p11, %p1835_p8 }
 0xdbe   :  { %v1232_v4 = vpop.xlane.xlu1 %1231 }
 0xdbf   :  { %v1236_v12 = vmul.f32 0.03125, %v1232_v4 }
 0xdc0   :  { %v1235_v13 = vpop.xlane.xlu0 %1234 }
 0xdc1   :  { %v1237_v15 = vmul.f32 0.03125, %v1235_v13  ;;  %v1248_v17 = vmul.f32 %v1236_v12, %v1236_v12  ;;  %v1252_v28 = vsub.f32 %v1228_v62, %v1236_v12 }
 0xdc2   :  { %v1242_v16 = vpop.xlane.xlu1 %1241 }
 0xdc3   :  { %v1246_v18 = vmul.f32 0.03125, %v1242_v16  ;;  %v1249_v21 = vmul.f32 %v1237_v15, %v1237_v15  ;;  %v1253_v31 = vsub.f32 %v1229_v1, %v1237_v15 }
 0xdc4   :  { %v1245_v20 = vpop.xlane.xlu0 %1244 }
 0xdc5   :  { %v1250_v23 = vsub.f32 %v1246_v18, %v1248_v17  ;;  %v1247_v24 = vmul.f32 0.03125, %v1245_v20 }
 0xdc7   :  { %v1254_v25 = vadd.f32 1e-05, %v1250_v23  ;;  %v1251_v26 = vsub.f32 %v1247_v24, %v1249_v21 }
 0xdc9   :  { %1800 = vrsqrt.f32 %v1254_v25  ;;  %v1255_v27 = vadd.f32 1e-05, %v1251_v26 }
 0xdcb   :  { %1802 = vrsqrt.f32 %v1255_v27 }
 0xdd3   :  { %v1801_v29 = vpop.eup %1800 }
 0xdd4   :  { %v1258_v19 = vmul.f32 %v1801_v29, %v1252_v28 }
 0xdd5   :  { %v1803_v32 = vpop.eup %1802 }
 0xdd6   :  { %v1259_v33 = vmul.f32 %v1803_v32, %v1253_v31  ;;  %v1266_v34 = vmul.f32 %v2174_v30, %v1258_v19 }
 0xdd8   :  { %v1267_v35 = vmul.f32 %v2174_v30, %v1259_v33  ;;  %v1274_v36 = vadd.f32 %v2180_v22, %v1266_v34 }
 0xdda   :  { %v1275_v11 = vadd.f32 %v2180_v22, %v1267_v35 }
 0xddc   :  { %v1276_v37 = vpack.c.bf16 %v1275_v11, %v1274_v36 }
 0xdde   :  { %1727 = vmatmul.mubr.msk.bf16.vlgmr.msra.gmra.mrb[44].mxu1 %vm80_vm1, %v1276_v37 }
 0xeb1   :  { %v1337_v43 = vpop.f32.mrb[44].mxu1 }
 0xeb2   :  { %v1338_v44 = vadd.f32 %v1531_v42, %v1337_v43  ;;  %v1728_v14 = vpop.f32.mrb[45].mxu1 }
 0xeb3   :  { %v1340_v45 = vpop.f32.mrb[46].mxu1 }
 0xeb4   :  { %v1346_v46 = vmul.f32 0.044715, %v1338_v44  ;;  %v1341_v47 = vadd.f32 %v1531_v42, %v1340_v45  ;;  %v1729_v48 = vpop.f32.mrb[47].mxu1  ;;  %v1344_v60 = vmul.f32 0.5, %v1338_v44 }
 0xeb6   :  { %v1348_v49 = vmul.f32 %v1346_v46, %v1338_v44  ;;  %v1347_v50 = vmul.f32 0.044715, %v1341_v47  ;;  %v1345_v61 = vmul.f32 0.5, %v1341_v47 }
 0xeb8   :  { %v1350_v51 = vmul.f32 %v1348_v49, %v1338_v44  ;;  %v1349_v52 = vmul.f32 %v1347_v50, %v1341_v47 }
 0xeba   :  { %v1352_v53 = vadd.f32 %v1350_v51, %v1338_v44  ;;  %v1351_v54 = vmul.f32 %v1349_v52, %v1341_v47 }
 0xebc   :  { %v1354_v55 = vmul.f32 0.7978846, %v1352_v53  ;;  %v1353_v0 = vadd.f32 %v1351_v54, %v1341_v47 }
 0xebe   :  { %1804 = vtanh.f32 %v1354_v55  ;;  %v1355_v56 = vmul.f32 0.7978846, %v1353_v0 }
 0xec0   :  { %1806 = vtanh.f32 %v1355_v56 }
 0xec8   :  { %v1805_v57 = vpop.eup %1804 }
 0xec9   :  { %v1358_v58 = vadd.f32 1.0, %v1805_v57 }
 0xeca   :  { %v1807_v59 = vpop.eup %1806 }
 0xecb   :  { %v1359_v62 = vadd.f32 1.0, %v1807_v59  ;;  %v1360_v63 = vmul.f32 %v1358_v58, %v1344_v60 }
 0xecd   :  { %v1361_v1 = vmul.f32 %v1359_v62, %v1345_v61 }
 0xecf   :  { %v1362_v2 = vpack.c.bf16 %v1361_v1, %v1360_v63 }
 0xed1   :  { %1739 = vmatmul.mubr.msk.bf16.vlgmr.msra.gmra.mrb[40].mxu0 %vm1402_vm4, %v1362_v2 }
 0xfa4   :  { %v1440_v6 = vpop.f32.mrb[40].mxu0 }
 0xfa5   :  { %v1441_v7 = vadd.f32 %v1535_v5, %v1440_v6  ;;  %v1740_v8 = vpop.f32.mrb[41].mxu0 }
 0xfa6   :  { %v1443_v9 = vpop.f32.mrb[42].mxu0 }
 0xfa7   :  { %v1447_v10 = vadd.f32 %v1441_v7, %v1274_v36  ;;  %v1444_v3 = vadd.f32 %v1535_v5, %v1443_v9  ;;  %v1741_v4 = vpop.f32.mrb[43].mxu0 }
 0xfa9   :  { %v1448_v12 = vadd.f32 %v1444_v3, %v1275_v11  ;;  %v1449_v13 = vsel %vm80_vm1, %v1447_v10, 0.0  ;;  %v1457_v15 = vmul.f32 %v1447_v10, %v1447_v10 }
 0xfaa   :  { %1450 = vadd.xlane.f32.xlu1 %v1449_v13 }
 0xfab   :  { %v1452_v16 = vsel %vm80_vm1, %v1448_v12, 0.0  ;;  %v1458_v17 = vmul.f32 %v1448_v12, %v1448_v12  ;;  %v1459_v18 = vsel %vm80_vm1, %v1457_v15, 0.0 }
 0xfac   :  { %1453 = vadd.xlane.f32.xlu0 %v1452_v16 }
 0xfad   :  { %v1462_v20 = vsel %vm80_vm1, %v1458_v17, 0.0 }
 0xfae   :  { %1460 = vadd.xlane.f32.xlu1 %v1459_v18 }
 0xfb0   :  { %1463 = vadd.xlane.f32.xlu0 %v1462_v20 }
0x1037   :  { %v1451_v21 = vpop.xlane.xlu1 %1450 }
0x1038   :  { %v1455_v23 = vmul.f32 0.03125, %v1451_v21 }
0x1039   :  { %v1454_v24 = vpop.xlane.xlu0 %1453 }
0x103a   :  { %v1456_v25 = vmul.f32 0.03125, %v1454_v24  ;;  %v1467_v27 = vmul.f32 %v1455_v23, %v1455_v23  ;;  %v1471_v36 = vsub.f32 %v1447_v10, %v1455_v23 }
0x103b   :  { %v1461_v26 = vpop.xlane.xlu1 %1460 }
0x103c   :  { %v1465_v28 = vmul.f32 0.03125, %v1461_v26  ;;  %v1468_v31 = vmul.f32 %v1456_v25, %v1456_v25  ;;  %v1472_v37 = vsub.f32 %v1448_v12, %v1456_v25 }
0x103d   :  { %v1464_v29 = vpop.xlane.xlu0 %1463 }
0x103e   :  { %v1469_v19 = vsub.f32 %v1465_v28, %v1467_v27  ;;  %v1466_v32 = vmul.f32 0.03125, %v1464_v29 }
0x1040   :  { %v1473_v33 = vadd.f32 1e-05, %v1469_v19  ;;  %v1470_v34 = vsub.f32 %v1466_v32, %v1468_v31 }
0x1042   :  { %1808 = vrsqrt.f32 %v1473_v33  ;;  %v1474_v35 = vadd.f32 1e-05, %v1470_v34 }
0x1044   :  { %1810 = vrsqrt.f32 %v1474_v35 }
0x104c   :  { %v1809_v11 = vpop.eup %1808 }
0x104d   :  { %v1477_v38 = vmul.f32 %v1809_v11, %v1471_v36 }
0x104e   :  { %v1811_v39 = vpop.eup %1810 }
0x104f   :  { %v1478_v40 = vmul.f32 %v1811_v39, %v1472_v37  ;;  %v1479_v41 = vmul.f32 %v2174_v30, %v1477_v38 }
0x1051   :  { %v1480_v42 = vmul.f32 %v2174_v30, %v1478_v40  ;;  %v1481_v43 = vadd.f32 %v2180_v22, %v1479_v41 }
0x1053   :  { %v1482_v44 = vadd.f32 %v2180_v22, %v1480_v42  ;;  %1483 = vst.msk [vmem:[#allocation5] sm:$0xff] %vm80_vm1, %v1481_v43 }
0x1055   :  { %1484 = vst.msk [vmem:[#allocation5 + $0x8] sm:$0xff] %vm80_vm1, %v1482_v44 }
0x1056   :  { %1845 = shalt.err (!%p1842_p12)
}
0x1057   :  { %s1846_s29 = scalar_lea.hbm %s2240_s11, 256 }
0x1058   :  { %p1847_p13 = scmp.ne.s32.totalorder %s2240_s11, %s1846_s29  ;;  %p1850_p0 = scmp.lt.u32.totalorder %s1846_s29, %s2240_s11 }
0x105a   :  { %p1852_p1 = pnand %p1850_p0, %p1847_p13 }
0x105c   :  { %1855 = shalt.err (!%p1852_p1)
}
0x105d   :  { %s1876_s14 = smov 128   ;;  %s1877_s15 = smov 8  }
0x105e   :  { %1496 = dma.vmem_to_hbm [thread:$0]  %s1491_s25, 256, %s2240_s11, [#allocation4], %s1876_s14, %s1876_s14, %s1877_s15  }
0x105f   :  { %1858 = dma.done.wait [#allocation4], 256  }
0x1060   :  { %1859 = vsyncadd [#allocation4], 4294967040 }
0x1061   :  { %1500 = vsyncpa [#allocation3], 1 }
0x1062   :  { %1501 = vsyncpa [#allocation4], 1 }

</bundles_post_ra>
